<compile_context>
chip_gen: v7x
topology: tpu7x:2x2x1
jax: 0.10.0
libtpu: 0.0.40
codegen_flags: <defaults>
</compile_context>

<pallas_src>
import functools

import jax
import jax.numpy as jnp
from jax.experimental import pallas as pl
from jax.experimental.pallas import tpu as pltpu

_MiB = 1024 * 1024


def _se_kernel(x_ref, w1t_ref, b1_ref, w2t_ref, b2_ref, o_ref, *, inv_hw):
    # x_ref block: (Bt, C, HW), full extent in C and HW.
    x = x_ref[...]

    # AdaptiveAvgPool2d(1): mean over HW, accumulated in f32 without keeping
    # an upcast copy of the whole slab live.
    pooled = jnp.sum(x, axis=-1, dtype=jnp.float32) * inv_hw      # (Bt, C)

    # conv1 (1x1) as batched matmul: (Bt, C) @ (C, C_mid) + b1 -> ReLU
    h = jnp.dot(pooled, w1t_ref[...], preferred_element_type=jnp.float32)
    h = jnp.maximum(h + b1_ref[...], 0.0)                         # (Bt, C_mid)

    # conv2 (1x1): (Bt, C_mid) @ (C_mid, C) + b2
    g = jnp.dot(h, w2t_ref[...], preferred_element_type=jnp.float32)
    g = g + b2_ref[...]                                           # (Bt, C)

    # hardsigmoid: clamp(x/6 + 0.5, 0, 1)
    g = jnp.clip(g * (1.0 / 6.0) + 0.5, 0.0, 1.0)

    # Scale the native-dtype slab by the per-(batch, channel) gate.
    # (For f32 inputs this matches full-f32 math exactly; for bf16 inputs the
    # multiply is done in bf16 while pooling/matmuls stayed in f32.)
    o_ref[...] = x * g.astype(x.dtype)[:, :, None]


def _tpu_limits():
    """Per-core VMEM capacity and TensorCore count, with safe fallbacks."""
    vmem_cap = 128 * _MiB
    num_cores = 1
    try:
        info = pltpu.get_tpu_info()
        vmem_cap = int(getattr(info, "vmem_capacity_bytes", vmem_cap))
        num_cores = int(getattr(info, "num_cores", num_cores) or num_cores)
    except Exception:
        pass
    try:
        kind = jax.devices()[0].device_kind.lower()
        if "v7" in kind:                      # dual-core, 64 MiB/core part
            num_cores = max(num_cores, 2)
            vmem_cap = min(vmem_cap, 64 * _MiB)
    except Exception:
        pass
    return vmem_cap, num_cores


def _choose_batch_tile(B, bytes_per_image, tile_budget_bytes, min_grid_steps):
    """Largest divisor of B whose slab fits the per-buffer budget, preferring
    tiles that leave >= min_grid_steps grid iterations for pipelining."""
    fitting = [bt for bt in range(1, B + 1)
               if B % bt == 0 and bt * bytes_per_image <= tile_budget_bytes]
    if not fitting:
        # TODO(synk): single-image slab exceeds the VMEM budget; would need an
        # inner HW tiling with a two-pass pool-then-scale structure.
        return 1
    pipelined = [bt for bt in fitting if B // bt >= min_grid_steps]
    if pipelined:
        return max(pipelined)
    return max(fitting)


def se_module(x, w1, b1, w2, b2):
    """x: (B, C, H, W).  w1: (C_mid, C), b1: (C_mid,), w2: (C, C_mid), b2: (C,)."""
    B, C, H, W = x.shape
    C_mid = w1.shape[0]
    HW = H * W

    # Flatten spatial dims; no padding (block is full-extent in C and HW, so a
    # non-multiple-of-128 HW only costs a masked tail store inside the kernel).
    x_flat = x.reshape(B, C, HW)

    # Pre-transposed weights / row biases for lane-dense batched matmuls.
    w1t = jnp.transpose(w1)            # (C, C_mid)
    w2t = jnp.transpose(w2)            # (C_mid, C)
    b1_row = b1.reshape(1, C_mid)
    b2_row = b2.reshape(1, C)

    itemsize = jnp.dtype(x.dtype).itemsize
    bytes_per_image = C * HW * itemsize

    # Per-generation VMEM / pipelining budget.  The real pipelined footprint is
    # ~2x input block + 2x output block (+ tiny weights), so per-buffer budget
    # is vmem_limit / 6 to keep headroom.
    vmem_cap, num_cores = _tpu_limits()
    vmem_limit = min(int(vmem_cap * 3 // 4), 96 * _MiB)   # 96 MiB on v5e/v6e, 48 MiB on v7x
    tile_budget = max(vmem_limit // 6, 1 * _MiB)
    min_grid_steps = 2 * num_cores                        # >=2 steps per core when B allows

    Bt = _choose_batch_tile(B, bytes_per_image, tile_budget, min_grid_steps)
    grid_len = B // Bt

    kernel = functools.partial(_se_kernel, inv_hw=1.0 / HW)

    # Bandwidth-dominated: read x once, write out once, tiny weight traffic.
    bytes_accessed = 2 * B * C * HW * itemsize + (2 * C * C_mid + C + C_mid) * 4
    flops = 2 * B * C * HW + 4 * B * C * C_mid            # pool + scale + two matmuls
    cost = pl.CostEstimate(flops=flops, transcendentals=0,
                           bytes_accessed=bytes_accessed)

    out_flat = pl.pallas_call(
        kernel,
        out_shape=jax.ShapeDtypeStruct((B, C, HW), x.dtype),
        grid_spec=pltpu.PrefetchScalarGridSpec(
            num_scalar_prefetch=0,
            grid=(grid_len,),
            in_specs=[
                pl.BlockSpec((Bt, C, HW), lambda b: (b, 0, 0)),
                pl.BlockSpec((C, C_mid), lambda b: (0, 0)),
                pl.BlockSpec((1, C_mid), lambda b: (0, 0)),
                pl.BlockSpec((C_mid, C), lambda b: (0, 0)),
                pl.BlockSpec((1, C), lambda b: (0, 0)),
            ],
            out_specs=pl.BlockSpec((Bt, C, HW), lambda b: (b, 0, 0)),
        ),
        compiler_params=pltpu.CompilerParams(
            dimension_semantics=("parallel",),
            vmem_limit_bytes=vmem_limit,
        ),
        cost_estimate=cost,
    )(x_flat, w1t, b1_row, w2t, b2_row)

    return out_flat.reshape(B, C, H, W)


def _reference(x, w1, b1, w2, b2):
    pooled = jnp.mean(x, axis=(2, 3), keepdims=True)                     # (B, C, 1, 1)
    h = jnp.einsum('bcij,oc->boij', pooled, w1) + b1[None, :, None, None]
    h = jax.nn.relu(h)
    g = jnp.einsum('bcij,oc->boij', h, w2) + b2[None, :, None, None]
    g = jnp.clip(g / 6.0 + 0.5, 0.0, 1.0)                                # hardsigmoid
    return x * g


if __name__ == "__main__":
    # Module config: in_channels=8, reduction=4 -> hidden channels = 2
    B, C, H, W = 2, 8, 16, 16
    reduction = 4
    C_mid = C // reduction

    key = jax.random.PRNGKey(0)
    kx, k1, k2, k3, k4 = jax.random.split(key, 5)

    x = jax.random.normal(kx, (B, C, H, W), dtype=jnp.float32)
    # Conv2d 1x1 weights: stored as (out_channels, in_channels) since kernel=1
    w1 = jax.random.normal(k1, (C_mid, C), dtype=jnp.float32) * 0.5
    b1 = jax.random.normal(k2, (C_mid,), dtype=jnp.float32) * 0.1
    w2 = jax.random.normal(k3, (C, C_mid), dtype=jnp.float32) * 0.5
    b2 = jax.random.normal(k4, (C,), dtype=jnp.float32) * 0.1

    out = se_module(x, w1, b1, w2, b2)
    out = jax.block_until_ready(out)

    ref = _reference(x, w1, b1, w2, b2)
    assert out.shape == (B, C, H, W)
    assert jnp.allclose(out, ref, atol=1e-5, rtol=1e-5), "mismatch vs reference"

    print("KERNEL_OK")
</pallas_src>

<mosaic_0001>
module attributes {stable_mosaic.version = 11 : i64} {
  func.func @_se_kernel(%arg0: i32, %arg1: memref<1x8x256xf32, #tpu.memory_space<vmem>>, %arg2: memref<8x2xf32, #tpu.memory_space<vmem>>, %arg3: memref<1x2xf32, #tpu.memory_space<vmem>>, %arg4: memref<2x8xf32, #tpu.memory_space<vmem>>, %arg5: memref<1x8xf32, #tpu.memory_space<vmem>>, %arg6: memref<1x8x256xf32, #tpu.memory_space<vmem>>) attributes {dimension_semantics = [#tpu.dimension_semantics<parallel>], iteration_bounds = array<i64: 2>, scalar_prefetch = 0 : i64, scratch_operands = 0 : i64, tpu.core_type = #tpu.core_type<tc>, window_params = [{transform_indices = @transform_0, window_bounds = array<i64: 1, 8, 256>}, {pipeline_mode = #tpu.pipeline_mode<synchronous>, transform_indices = @transform_1, window_bounds = array<i64: 8, 2>}, {pipeline_mode = #tpu.pipeline_mode<synchronous>, transform_indices = @transform_2, window_bounds = array<i64: 1, 2>}, {pipeline_mode = #tpu.pipeline_mode<synchronous>, transform_indices = @transform_3, window_bounds = array<i64: 2, 8>}, {pipeline_mode = #tpu.pipeline_mode<synchronous>, transform_indices = @transform_4, window_bounds = array<i64: 1, 8>}, {transform_indices = @transform_5, window_bounds = array<i64: 1, 8, 256>}]} {
    %c0 = arith.constant 0 : index
    %c0_0 = arith.constant 0 : index
    %c0_1 = arith.constant 0 : index
    %0 = vector.load %arg1[%c0, %c0_0, %c0_1] : memref<1x8x256xf32, #tpu.memory_space<vmem>>, vector<1x8x256xf32>
    %cst = arith.constant dense<0.000000e+00> : vector<1x8xf32>
    %1 = vector.multi_reduction <add>, %0, %cst [2] : vector<1x8x256xf32> to vector<1x8xf32>
    %cst_2 = arith.constant 3.906250e-03 : f32
    %2 = vector.broadcast %cst_2 : f32 to vector<1x8xf32>
    %3 = arith.mulf %1, %2 : vector<1x8xf32>
    %c0_3 = arith.constant 0 : index
    %c0_4 = arith.constant 0 : index
    %4 = vector.load %arg2[%c0_3, %c0_4] : memref<8x2xf32, #tpu.memory_space<vmem>>, vector<8x2xf32>
    %cst_5 = arith.constant dense<0.000000e+00> : vector<1x2xf32>
    %5 = tpu.matmul %3, %4, %cst_5 {dimension_numbers = #tpu.dot_dimension_numbers<[1], [0], [0], [1], [0, 0, 1, 1], [], []>} : vector<1x8xf32>, vector<8x2xf32>, vector<1x2xf32> -> vector<1x2xf32>
    %c0_6 = arith.constant 0 : index
    %c0_7 = arith.constant 0 : index
    %6 = vector.load %arg3[%c0_6, %c0_7] : memref<1x2xf32, #tpu.memory_space<vmem>>, vector<1x2xf32>
    %7 = arith.addf %5, %6 : vector<1x2xf32>
    %cst_8 = arith.constant 0.000000e+00 : f32
    %8 = vector.broadcast %cst_8 : f32 to vector<1x2xf32>
    %9 = arith.maximumf %7, %8 : vector<1x2xf32>
    %c0_9 = arith.constant 0 : index
    %c0_10 = arith.constant 0 : index
    %10 = vector.load %arg4[%c0_9, %c0_10] : memref<2x8xf32, #tpu.memory_space<vmem>>, vector<2x8xf32>
    %cst_11 = arith.constant dense<0.000000e+00> : vector<1x8xf32>
    %11 = tpu.matmul %9, %10, %cst_11 {dimension_numbers = #tpu.dot_dimension_numbers<[1], [0], [0], [1], [0, 0, 1, 1], [], []>} : vector<1x2xf32>, vector<2x8xf32>, vector<1x8xf32> -> vector<1x8xf32>
    %c0_12 = arith.constant 0 : index
    %c0_13 = arith.constant 0 : index
    %12 = vector.load %arg5[%c0_12, %c0_13] : memref<1x8xf32, #tpu.memory_space<vmem>>, vector<1x8xf32>
    %13 = arith.addf %11, %12 : vector<1x8xf32>
    %cst_14 = arith.constant 0.166666672 : f32
    %14 = vector.broadcast %cst_14 : f32 to vector<1x8xf32>
    %15 = arith.mulf %13, %14 : vector<1x8xf32>
    %cst_15 = arith.constant 5.000000e-01 : f32
    %16 = vector.broadcast %cst_15 : f32 to vector<1x8xf32>
    %17 = arith.addf %15, %16 : vector<1x8xf32>
    %cst_16 = arith.constant 0.000000e+00 : f32
    %cst_17 = arith.constant 1.000000e+00 : f32
    %18 = vector.broadcast %cst_16 : f32 to vector<1x8xf32>
    %19 = arith.maximumf %18, %17 : vector<1x8xf32>
    %20 = vector.broadcast %cst_17 : f32 to vector<1x8xf32>
    %21 = arith.minimumf %20, %19 : vector<1x8xf32>
    %22 = vector.shape_cast %21 : vector<1x8xf32> to vector<1x8x1xf32>
    %23 = vector.broadcast %22 : vector<1x8x1xf32> to vector<1x8x256xf32>
    %24 = arith.mulf %0, %23 : vector<1x8x256xf32>
    %c0_18 = arith.constant 0 : index
    %c0_19 = arith.constant 0 : index
    %c0_20 = arith.constant 0 : index
    %25 = vector.load %arg6[%c0_18, %c0_19, %c0_20] : memref<1x8x256xf32, #tpu.memory_space<vmem>>, vector<1x8x256xf32>
    tpu.vector_store %arg6[%c0_18, %c0_19, %c0_20], %24 {strides = array<i32>} : memref<1x8x256xf32, #tpu.memory_space<vmem>>, vector<1x8x256xf32>,
    return
  }
  func.func @transform_0(%arg0: i32) -> (i32, i32, i32) {
    %c0_i32 = arith.constant 0 : i32
    %c0_i32_0 = arith.constant 0 : i32
    %c0_i32_1 = arith.constant 0 : i32
    return %arg0, %c0_i32, %c0_i32_0 : i32, i32, i32
  }
  func.func @transform_1(%arg0: i32) -> (i32, i32) {
    %c0_i32 = arith.constant 0 : i32
    %c0_i32_0 = arith.constant 0 : i32
    %c0_i32_1 = arith.constant 0 : i32
    return %c0_i32, %c0_i32_0 : i32, i32
  }
  func.func @transform_2(%arg0: i32) -> (i32, i32) {
    %c0_i32 = arith.constant 0 : i32
    %c0_i32_0 = arith.constant 0 : i32
    %c0_i32_1 = arith.constant 0 : i32
    return %c0_i32, %c0_i32_0 : i32, i32
  }
  func.func @transform_3(%arg0: i32) -> (i32, i32) {
    %c0_i32 = arith.constant 0 : i32
    %c0_i32_0 = arith.constant 0 : i32
    %c0_i32_1 = arith.constant 0 : i32
    return %c0_i32, %c0_i32_0 : i32, i32
  }
  func.func @transform_4(%arg0: i32) -> (i32, i32) {
    %c0_i32 = arith.constant 0 : i32
    %c0_i32_0 = arith.constant 0 : i32
    %c0_i32_1 = arith.constant 0 : i32
    return %c0_i32, %c0_i32_0 : i32, i32
  }
  func.func @transform_5(%arg0: i32) -> (i32, i32, i32) {
    %c0_i32 = arith.constant 0 : i32
    %c0_i32_0 = arith.constant 0 : i32
    %c0_i32_1 = arith.constant 0 : i32
    return %arg0, %c0_i32, %c0_i32_0 : i32, i32, i32
  }
}

</mosaic_0001>

<bundles_post_ra>
// kernel: tpu_custom_call.1
= control target key start
LH: loop header
LB: loop body
LE: loop exit
PB: predicated region body
PF: predicated region fallthrough
CT: control target
= control target key end

     0   :  { %10 = vsyncpa [#allocation3], 0  ;;  %s1272_s0 = inlined_call_operand.hbm [shape: f32[2,8,256], index: 0, kind: input, shape index: {}]   ;;  %s1273_s1 = inlined_call_operand.hbm [shape: f32[8,2], index: 1, kind: input, shape index: {}]   ;;  %s1274_s2 = inlined_call_operand.hbm [shape: f32[1,2], index: 2, kind: input, shape index: {}]   ;;  %s1275_s3 = inlined_call_operand.hbm [shape: f32[2,8], index: 3, kind: input, shape index: {}]   ;;  %s1276_s4 = inlined_call_operand.hbm [shape: f32[1,8], index: 4, kind: input, shape index: {}]   ;;  %s1277_s5 = inlined_call_operand.hbm [shape: f32[2,8,256], index: 5, kind: output, shape index: {}]  }
   0x1   :  { %12 = vsyncpa [#allocation3 + $0x1], 0 }
   0x2   :  { %13 = vsyncpa [#allocation6], 0 }
   0x3   :  { %14 = vsyncpa [#allocation9], 0 }
   0x4   :  { %15 = vsyncpa [#allocation4], 0 }
   0x5   :  { %17 = vsyncpa [#allocation4 + $0x1], 0  ;;  %s984_s18 = smov 0   ;;  %s986_s19 = smov 0  }
   0x6   :  { %s988_s20 = smov 0   ;;  %s990_s21 = smov 0  }
   0x7 LB: > { %s946_s22 = smov [#allocation5]   ;;  %s1005_s24 = sadd.s32 4294967295, %s944_s21   ;;  %s944_s21 = sphi %s990_s21, %s1301_s21   ;;  %s940_s20 = sphi %s988_s20, %s1300_s20   ;;  %s936_s19 = sphi %s986_s19, %s1299_s19   ;;  %s932_s18 = sphi %s984_s18, %s1298_s18  }
   0x8   : > { %s177_s23 = sshll.u32 %s946_s22, 4  ;;  %p599_p0 = scmp.ge.s32.totalorder %s944_s21, 1  ;;  %s1010_s23 = int_to_ptr.vmem [resolvable:$true] %s177_s23 }
   0x9   : > { %p1278_p1 = scmp.eq.s32.totalorder %s1005_s24, 0  ;;  %p164_p2 = scmp.lt.s32.totalorder %s944_s21, 3 }
   0xa   : > { %s947_s26 = smov [#allocation8]   ;;  %s948_s28 = smov [#allocation7]  }
   0xb   : > { %p1012_p3 = pnand %p599_p0, %p164_p2  ;;  %s199_s27 = sshll.u32 %s947_s26, 4  ;;  %s1019_s27 = int_to_ptr.vmem [resolvable:$true] %s199_s27 }
   0xc   : > { %s188_s29 = sshll.u32 %s948_s28, 4  ;;  %s949_s6 = smov [#allocation10]   ;;  %s1027_s29 = int_to_ptr.vmem [resolvable:$true] %s188_s29 }
   0xd   : > { %s1281_s25 = scalar_select %p1012_p3, 1, 0 }
   0xe   : > { %p659_p5 = pneg %p1012_p3  ;;  %s1029_s7 = sshll.u32 %s949_s6, 4  ;;  %s211_s7 = int_to_ptr.vmem [resolvable:$true] %s1029_s7 }
   0xf   : > { %s728_s10 = scalar_lea.hbm %s1273_s1, 128 }
  0x10   : > { %p1023_p6 = pnand %p659_p5, %p1278_p1  ;;  %p729_p7 = scmp.ne.s32.totalorder %s1273_s1, %s728_s10 }
  0x11   : > { %p735_p11 = scmp.lt.u32.totalorder %s728_s10, %s1273_s1 }
  0x12   : > { %p1039_p8 = pneg %p1023_p6 }
  0x14   : > { %p731_p9 = pnand %p1039_p8, %p729_p7 }
  0x16   : > { %p732_p10 = pneg %p731_p9 }
  0x18   : > { %p737_p12 = pnand %p735_p11, %p732_p10 }
  0x1a   : > { %740 = shalt.err (!%p737_p12)
}
  0x1b   : > { %s741_s16 = scalar_lea.vmem %s1010_s23, 128  ;;  %p749_p5 = scmp.lt.s32.totalorder %s1010_s23, %s1010_s23 }
  0x1c   : > { %p742_p13 = scmp.ne.s32.totalorder %s1010_s23, %s741_s16  ;;  %p750_p4 = scmp.lt.s32.totalorder %s741_s16, %s741_s16 }
  0x1e   : > { %p744_p0 = pnand %p742_p13, %p1039_p8  ;;  %p751_p7 = por %p750_p4, %p749_p5 }
  0x20   : > { %p745_p2 = pneg %p744_p0 }
  0x22   : > { %p752_p9 = pnand %p751_p7, %p745_p2 }
  0x24   : > { %755 = shalt.err (!%p752_p9)
}
  0x25   : > { %662 = dma.hbm_to_vmem [thread:$0]  (!%p1023_p6), %s1273_s1, 128, %s1010_s23, [#allocation6]  }
  0x26   : > { %s756_s6 = scalar_lea.hbm %s1275_s3, 32 }
  0x27   : > { %p757_p10 = scmp.ne.s32.totalorder %s1275_s3, %s756_s6  ;;  %p763_p12 = scmp.lt.u32.totalorder %s756_s6, %s1275_s3 }
  0x29   : > { %p759_p4 = pnand %p757_p10, %p1039_p8 }
  0x2b   : > { %p760_p11 = pneg %p759_p4 }
  0x2d   : > { %p765_p13 = pnand %p763_p12, %p760_p11 }
  0x2f   : > { %768 = shalt.err (!%p765_p13)
}
  0x30   : > { %s769_s23 = scalar_lea.vmem %s1019_s27, 32  ;;  %p777_p7 = scmp.lt.s32.totalorder %s1019_s27, %s1019_s27 }
  0x31   : > { %p770_p0 = scmp.ne.s32.totalorder %s1019_s27, %s769_s23  ;;  %p778_p9 = scmp.lt.s32.totalorder %s769_s23, %s769_s23 }
  0x33   : > { %p772_p2 = pnand %p770_p0, %p1039_p8  ;;  %p779_p10 = por %p778_p9, %p777_p7 }
  0x35   : > { %p773_p5 = pneg %p772_p2 }
  0x37   : > { %p780_p4 = pnand %p779_p10, %p773_p5 }
  0x39   : > { %783 = shalt.err (!%p780_p4)
}
  0x3a   : > { %668 = dma.hbm_to_vmem [thread:$0]  (!%p1023_p6), %s1275_s3, 32, %s1019_s27, [#allocation9]  }
  0x3b   : > { %s784_s17 = scalar_lea.hbm %s1274_s2, 16 }
  0x3c   : > { %p785_p11 = scmp.ne.s32.totalorder %s1274_s2, %s784_s17  ;;  %p791_p0 = scmp.lt.u32.totalorder %s784_s17, %s1274_s2 }
  0x3e   : > { %p787_p12 = pnand %p785_p11, %p1039_p8 }
  0x40   : > { %p788_p13 = pneg %p787_p12 }
  0x42   : > { %p793_p2 = pnand %p791_p0, %p788_p13 }
  0x44   : > { %796 = shalt.err (!%p793_p2)
}
  0x45   : > { %s797_s27 = scalar_lea.vmem %s1027_s29, 16  ;;  %s804_s8 = scalar_lea.vmem %s1027_s29, 32 }
  0x46   : > { %p798_p5 = scmp.ne.s32.totalorder %s1027_s29, %s797_s27  ;;  %p805_p10 = scmp.lt.s32.totalorder %s1027_s29, %s1027_s29 }
  0x47   : > { %p806_p4 = scmp.lt.s32.totalorder %s804_s8, %s797_s27 }
  0x48   : > { %p800_p7 = pnand %p798_p5, %p1039_p8 }
  0x49   : > { %p807_p11 = por %p806_p4, %p805_p10 }
  0x4a   : > { %p801_p9 = pneg %p800_p7 }
  0x4c   : > { %p808_p12 = pnand %p807_p11, %p801_p9 }
  0x4e   : > { %811 = shalt.err (!%p808_p12)
}
  0x4f   : > { %665 = dma.hbm_to_vmem [thread:$0]  (!%p1023_p6), %s1274_s2, 16, %s1027_s29, [#allocation6]  }
  0x50   : > { %s812_s12 = scalar_lea.hbm %s1276_s4, 16 }
  0x51   : > { %p813_p13 = scmp.ne.s32.totalorder %s1276_s4, %s812_s12  ;;  %p819_p5 = scmp.lt.u32.totalorder %s812_s12, %s1276_s4 }
  0x53   : > { %p815_p0 = pnand %p813_p13, %p1039_p8 }
  0x55   : > { %p816_p2 = pneg %p815_p0 }
  0x57   : > { %p821_p7 = pnand %p819_p5, %p816_p2 }
  0x59   : > { %824 = shalt.err (!%p821_p7)
}
  0x5a   : > { %s825_s22 = scalar_lea.vmem %s211_s7, 16  ;;  %s832_s29 = scalar_lea.vmem %s211_s7, 32 }
  0x5b   : > { %p826_p9 = scmp.ne.s32.totalorder %s211_s7, %s825_s22  ;;  %p833_p11 = scmp.lt.s32.totalorder %s211_s7, %s211_s7 }
  0x5c   : > { %p834_p12 = scmp.lt.s32.totalorder %s832_s29, %s825_s22 }
  0x5d   : > { %p828_p10 = pnand %p826_p9, %p1039_p8 }
  0x5e   : > { %p835_p1 = por %p834_p12, %p833_p11 }
  0x5f   : > { %p829_p4 = pneg %p828_p10 }
  0x61   : > { %p836_p3 = pnand %p835_p1, %p829_p4 }
  0x63   : > { %839 = shalt.err (!%p836_p3)
}
  0x64   : > { %671 = dma.hbm_to_vmem [thread:$0]  (!%p1023_p6), %s1276_s4, 16, %s211_s7, [#allocation9]  }
  0x65   : > { %s598_s13 = sadd.s32 4294967294, %s944_s21   ;;  %s1128_s30 = sadd.s32 1, %s944_s21  }
  0x66   : > { %s27_s6 = ssub.s32 %s944_s21, %s1128_s30  ;;  %s30_s27 = sadd.s32 1, %s940_s20 }
  0x67   : > { %p28_p1 = scmp.eq.s32.totalorder %s27_s6, 0  ;;  %p37_p3 = scmp.ne.s32.totalorder %s940_s20, %s936_s19 }
  0x68   : > { %p38_p8 = scmp.eq.s32.totalorder %s944_s21, 0  ;;  %p43_p13 = scmp.ne.s32.totalorder %s936_s19, %s932_s18 }
  0x69   : > { %s1139_s8 = scalar_select %p28_p1, %s940_s20, %s30_s27  }
  0x6a   : > { %p1141_p0 = por %p38_p8, %p37_p3  ;;  %p1285_p2 = scmp.eq.s32.totalorder %s1005_s24, 0 }
  0x6b   : > { %p151_p5 = scmp.eq.s32.totalorder %s1005_s24, 1  ;;  %p157_p7 = scmp.eq.s32.totalorder %s598_s13, 1 }
  0x6c   : > { %p1147_p6 = por %p1285_p2, %p43_p13  ;;  %p684_p9 = scmp.lt.s32.totalorder %s944_s21, 2 }
  0x6d   : > { %s221_s10 = sand.u32 1, %s940_s20   ;;  %p1154_p10 = por %p151_p5, %p37_p3 }
  0x6e   : > { %p1158_p4 = por %p157_p7, %p43_p13  ;;  %s605_s12 = sshll.u32 %s221_s10, 4 }
  0x6f   : > { %s1287_s11 = scalar_select %p1154_p10, 1, 0 }
  0x70   : > { %s1288_s23 = scalar_select %p1158_p4, 1, 0 }
  0x71   : > { %s623_s14 = sshll.u32 %s944_s21, 8  ;;  %s225_s22 = scalar_lea.vmem [#allocation2], %s605_s12 }
  0x72   : > { %s1166_s17 = scalar_lea.hbm %s1272_s0, %s623_s14  ;;  %s233_s29 = sshll.u32 %s225_s22, 4  ;;  %s1168_s29 = int_to_ptr.vmem [resolvable:$true] %s233_s29 }
  0x73   : > { %p1172_p11 = pnand %p684_p9, %p1141_p0  ;;  %s222_s28 = scalar_lea.sflag [#allocation3], %s221_s10 }
  0x74   : > { %s840_s13 = scalar_lea.hbm %s1166_s17, 256  ;;  %s845_s12 = scalar_lea.hbm %s1272_s0, 512 }
  0x75   : > { %p841_p12 = scmp.ne.s32.totalorder %s1166_s17, %s840_s13  ;;  %p842_p1 = pneg %p1172_p11 }
  0x76   : > { %p846_p13 = scmp.lt.u32.totalorder %s1166_s17, %s1272_s0  ;;  %p847_p0 = scmp.lt.u32.totalorder %s845_s12, %s840_s13 }
  0x77   : > { %p843_p3 = pnand %p842_p1, %p841_p12  ;;  %p849_p5 = scmp.lt.u32.totalorder %s840_s13, %s1166_s17 }
  0x78   : > { %p848_p2 = por %p847_p0, %p846_p13 }
  0x79   : > { %p844_p8 = pneg %p843_p3 }
  0x7a   : > { %p850_p7 = por %p849_p5, %p848_p2 }
  0x7c   : > { %p851_p9 = pnand %p850_p7, %p844_p8 }
  0x7e   : > { %854 = shalt.err (!%p851_p9)
}
  0x7f   : > { %s855_s10 = scalar_lea.vmem %s1168_s29, 256  ;;  %s950_s15 = smov [#allocation2]  }
  0x80   : > { %p856_p12 = scmp.ne.s32.totalorder %s1168_s29, %s855_s10  ;;  %s860_s16 = sshll.u32 %s950_s15, 4  ;;  %s861_s16 = int_to_ptr.vmem [resolvable:$false] %s860_s16 }
  0x81   : > { %s862_s22 = scalar_lea.vmem %s861_s16, 512  ;;  %p863_p10 = scmp.lt.s32.totalorder %s1168_s29, %s861_s16 }
  0x82   : > { %p858_p3 = pnand %p856_p12, %p842_p1  ;;  %p864_p13 = scmp.lt.s32.totalorder %s862_s22, %s855_s10 }
  0x84   : > { %p859_p4 = pneg %p858_p3  ;;  %p865_p0 = por %p864_p13, %p863_p10 }
  0x86   : > { %p866_p2 = pnand %p865_p0, %p859_p4 }
  0x88   : > { %869 = shalt.err (!%p866_p2)
}
  0x89   : > { %675 = dma.hbm_to_vmem [thread:$0]  (!%p1172_p11), %s1166_s17, 256, %s1168_s29, %s222_s28  }
  0x8a   : > { %p1290_p8 = scmp.ne.s32.totalorder %s1281_s25, 0 }
  0x8b   : > { %s1204_s13 = sand.u32 (!%p1290_p8), 1, %s936_s19  }
  0x8c   : > { %242 = sbr.rel (%p1290_p8) target bundleno = 875 (0x36b), region = 40  ;;  %s609_s6 = sshll.u32 (!%p1290_p8), %s1204_s13, 4 }
  0x8d   : > { %s245_s27 = scalar_lea.sflag (!%p1290_p8), [#allocation3], %s1204_s13  ;;  %s248_s12 = scalar_lea.vmem (!%p1290_p8), [#allocation2], %s609_s6 }
  0x93   : > { %915 = dma.done.wait (%p1147_p6), %s245_s27, 256  }
  0x94   : > { %917 = vsyncadd (%p1147_p6), %s245_s27, 4294967040  ;;  %p1291_p10 = scmp.eq.s32.totalorder %s1005_s24, 0 }
  0x96   : > { %919 = dma.done.wait (%p1291_p10), [#allocation6], 144   ;;  %p1292_p4 = pmov %p1291_p10 }
  0x98   : > { %921 = vsyncadd (%p1292_p4), [#allocation6], 4294967152  ;;  %p1293_p11 = pmov %p1292_p4 }
  0x99   : > { %p1294_p1 = pmov %p1292_p4 }
  0x9a   : > { %923 = dma.done.wait (%p1293_p11), [#allocation9], 48  }
  0x9b   : > { %925 = vsyncadd (%p1294_p1), [#allocation9], 4294967248  ;;  %v291_v0 = vld [vmem:[%s248_s12] sm:$0xff]  ;;  %v292_v1 = vld [vmem:[%s248_s12 + $0x8] sm:$0xff]  ;;  %v951_v3 = vmov 0.0   ;;  %vm952_vm0 = vmmov 0   ;;  %v300_v5 = vlaneseq }
  0x9c   : > { %v293_v2 = vadd.f32 %v292_v1, %v291_v0  ;;  %629 = vmatprep.subr.mxu0 %v951_v3  ;;  %v297_v4 = vld [vmem:[#allocation5] sm:$0xff]  ;;  %634 = vmatprep.subr.mxu1 %v951_v3  ;;  %vm306_vm1 = vcmask 64512   ;;  %v380_v12 = vld [vmem:[#allocation8] sm:$0x3]  ;;  %vm386_vm2 = vcmask 1041408   ;;  %vm382_vm3 = vcmask 15360  }
  0x9d   : > { %630 = vmatpush3.msra.mxu0 %v297_v4  ;;  %631 = vmatprep.mubr.msk.f32.mxu0 %vm952_vm0, %v951_v3  ;;  %v301_v6 = vand.u32 127, %v300_v5  ;;  %v303_v7 = vshrl.u32 %v300_v5, 7  ;;  %v298_v13 = vld [vmem:[#allocation7] sm:$0x1]  ;;  %v381_v18 = vld [vmem:[#allocation10] sm:$0x1] }
  0x9e   : > { %294 = vadd.xlane.f32.xlu0 %v293_v2  ;;  %636 = vmatprep.mubr.msk.f32.mxu1 %vm952_vm0, %v951_v3  ;;  %s624_s25 = sshll.u32 %s1005_s24, 8  ;;  %s290_s7 = scalar_lea.vmem [#allocation11], %s609_s6 }
  0x9f   : > { %v304_v8 = vsub.s32 %v301_v6, %v303_v7  ;;  %635 = vmatpush3.msk.msra.mxu1 %vm386_vm2, %v380_v12  ;;  %v466_v25 = vsub.s32 0, %v303_v7  ;;  %s490_s17 = sshll.u32 %s290_s7, 4  ;;  %s1228_s28 = scalar_lea.hbm %s1277_s5, %s624_s25  ;;  %s1230_s17 = int_to_ptr.vmem [resolvable:$true] %s490_s17 }
  0xa0   : > { %s476_s9 = scalar_lea.sflag [#allocation4], %s1204_s13  ;;  %s870_s24 = scalar_lea.vmem %s1230_s17, 256 }
  0xa1   : > { %p871_p6 = scmp.ne.s32.totalorder %s1230_s17, %s870_s24  ;;  %p1295_p5 = scmp.ne.s32.totalorder %s1287_s11, 0 }
  0xa2   : > { %s953_s14 = smov [#allocation11]  }
  0xa3   : > { %p872_p7 = pnand %p871_p6, %p1295_p5  ;;  %s874_s10 = sshll.u32 %s953_s14, 4  ;;  %s875_s10 = int_to_ptr.vmem [resolvable:$false] %s874_s10 }
  0xa4   : > { %s876_s15 = scalar_lea.vmem %s875_s10, 512  ;;  %p877_p12 = scmp.lt.s32.totalorder %s1230_s17, %s875_s10 }
  0xa5   : > { %p873_p9 = pneg %p872_p7  ;;  %p878_p3 = scmp.lt.s32.totalorder %s876_s15, %s870_s24 }
  0xa7   : > { %p879_p13 = por %p878_p3, %p877_p12 }
  0xa9   : > { %p880_p0 = pnand %p879_p13, %p873_p9 }
 0x12b   : > { %v295_v9 = vpop.xlane.xlu0 %294 }
 0x12c   : > { %v296_v10 = vmul.f32 0.00390625, %v295_v9 }
 0x12e   : > { %v305_v11 = vrot.slane %v296_v10, %v304_v8 }
 0x130   : > { %632 = vmatmul.mubr.msk.f32.vlgmr.msra.gmra.mrb[0].mxu0 %vm306_vm1, %v305_v11 }
 0x203   : > { %v375_v14 = vpop.f32.mrb[0].mxu0 }
 0x204   : > { %v376_v15 = vadd.f32 %v375_v14, %v298_v13  ;;  %v633_v16 = vpop.f32.mrb[1].mxu0 }
 0x206   : > { %v379_v17 = vmax.f32 %v376_v15, 0.0 }
 0x208   : > { %637 = vmatmul.mubr.msk.f32.vlgmr.msra.gmra.mrb[0].mxu1 %vm382_vm3, %v379_v17 }
 0x2db   : > { %v456_v19 = vpop.f32.mrb[0].mxu1 }
 0x2dc   : > { %v457_v20 = vadd.f32 %v456_v19, %v381_v18  ;;  %v638_v21 = vpop.f32.mrb[1].mxu1 }
 0x2de   : > { %v460_v22 = vmul.f32 0.16666667, %v457_v20 }
 0x2e0   : > { %v461_v23 = vadd.f32 0.5, %v460_v22 }
 0x2e2   : > { %v462_v24 = vmax.f32 %v461_v23, 0.0 }
 0x2e4   : > { %v463_v26 = vmin.f32 %v462_v24, 1.0 }
 0x2e6   : > { %v467_v27 = vrot.slane %v463_v26, %v466_v25 }
 0x2e8   : > { %469 = vbcast.lane.b32.xlu0 %v467_v27, 256 }
 0x35a   : > { %v470_v28 = vpop.permute.xlu0 %469 }
 0x35b   : > { %v471_v29 = vmul.f32 %v470_v28, %v291_v0  ;;  %v472_v30 = vmul.f32 %v470_v28, %v292_v1 }
 0x35d   : > { %473 = vst [vmem:[%s290_s7] sm:$0xff] %v471_v29  ;;  %474 = vst [vmem:[%s290_s7 + $0x8] sm:$0xff] %v472_v30 }
 0x35e   : > { %883 = shalt.err (!%p880_p0)
}
 0x35f   : > { %s884_s16 = scalar_lea.hbm %s1228_s28, 256  ;;  %s888_s6 = scalar_lea.hbm %s1277_s5, 512 }
 0x360   : > { %p885_p2 = scmp.ne.s32.totalorder %s1228_s28, %s884_s16  ;;  %p889_p4 = scmp.lt.u32.totalorder %s1228_s28, %s1277_s5 }
 0x361   : > { %p890_p11 = scmp.lt.u32.totalorder %s888_s6, %s884_s16  ;;  %p892_p6 = scmp.lt.u32.totalorder %s884_s16, %s1228_s28 }
 0x362   : > { %p886_p8 = pnand %p885_p2, %p1295_p5 }
 0x363   : > { %p891_p1 = por %p890_p11, %p889_p4 }
 0x364   : > { %p887_p10 = pneg %p886_p8 }
 0x365   : > { %p893_p7 = por %p892_p6, %p891_p1 }
 0x367   : > { %p894_p9 = pnand %p893_p7, %p887_p10 }
 0x369   : > { %897 = shalt.err (!%p894_p9)
}
 0x36a   : > { %657 = dma.vmem_to_hbm [thread:$0]  (%p1295_p5), %s1230_s17, 256, %s1228_s28, %s476_s9  }
 0x36b PF: > { %s502_s25 = sand.u32 1, %s932_s18   ;;  %p1296_p12 = scmp.ne.s32.totalorder %s1288_s23, 0 }
 0x36c   : > { %p1297_p3 = scmp.ge.s32.totalorder %s944_s21, 2  ;;  %s503_s7 = scalar_lea.sflag [#allocation4], %s502_s25 }
 0x36e   : > { %p677_p13 = pnand %p1297_p3, %p1296_p12 }
 0x370   : > { %927 = dma.done.wait (!%p677_p13), %s503_s7, 256  }
 0x371   : > { %929 = vsyncadd (!%p677_p13), %s503_s7, 4294967040  ;;  %p20_p0 = scmp.ge.s32.totalorder %s1128_s30, 4   ;;  %s1298_s18 = smov %s936_s19 }
 0x372   : > { %s1299_s19 = smov %s940_s20  ;;  %s1300_s20 = smov %s1139_s8 }
 0x373   : > { %s1301_s21 = smov %s1128_s30  ;;  %22 = sbr.rel (!%p20_p0) target bundleno = 7 (0x7), region = 101 }
 0x37a   :  { %508 = vsyncpa [#allocation3], 1 }
 0x37b   :  { %510 = vsyncpa [#allocation3 + $0x1], 1 }
 0x37c   :  { %511 = vsyncpa [#allocation6], 1 }
 0x37d   :  { %512 = vsyncpa [#allocation9], 1 }
 0x37e   :  { %513 = vsyncpa [#allocation4], 1 }
 0x37f   :  { %515 = vsyncpa [#allocation4 + $0x1], 1 }

</bundles_post_ra>
